<compile_context>
chip_gen: v6e
topology: v6e:2x2x1
jax: 0.10.0
libtpu: 0.0.40
codegen_flags: <defaults>
</compile_context>

<pallas_src>
import jax
import jax.numpy as jnp
from jax.experimental import pallas as pl
from jax.experimental.pallas import tpu as pltpu

TEMPERATURE = 0.07
BASE_TEMPERATURE = 0.07
INV_TEMPERATURE = 1.0 / TEMPERATURE
EPS = 1e-12  # F.normalize eps


def _proto_con_kernel(feat_ref, protoT_ref, labels_ref, plabels_ref, loss_ref):
    # feat_ref:    (TILE_N, D) input dtype (f32 or bf16)  VMEM
    # protoT_ref:  (D, P)      bf16 (pre-normalized, transposed) VMEM
    # labels_ref:  (TILE_N, 1) int32 VMEM
    # plabels_ref: (1, P)      int32 VMEM
    # loss_ref:    (TILE_N, 1) f32   VMEM (per-row loss)
    f = feat_ref[...].astype(jnp.float32)

    # L2-normalize rows via rsqrt (EUP), folding 1/temperature into the scale.
    # rsqrt(max(sumsq, eps^2)) == 1 / max(||x||, eps)  -> matches F.normalize.
    sumsq = jnp.sum(f * f, axis=1, keepdims=True)
    inv_norm = jax.lax.rsqrt(jnp.maximum(sumsq, EPS * EPS)) * INV_TEMPERATURE
    f_scaled = (f * inv_norm).astype(jnp.bfloat16)

    # (TILE_N, D) @ (D, P) on the MXU, bf16 operands, f32 accumulation.
    logits = jax.lax.dot_general(
        f_scaled,
        protoT_ref[...],
        (((1,), (0,)), ((), ())),
        preferred_element_type=jnp.float32,
    )  # (TILE_N, P), already divided by temperature

    # Numerically-stable log-softmax pieces (row max is detached in torch; no
    # grad here so identical).
    row_max = jnp.max(logits, axis=1, keepdims=True)
    shifted = logits - row_max
    lse = jnp.log(jnp.sum(jnp.exp(shifted), axis=1, keepdims=True))  # (TILE_N, 1)

    # proto_mask[i, j] = (labels[i] == proto_labels[j])
    mask = (labels_ref[...] == plabels_ref[...]).astype(jnp.float32)  # (TILE_N, P)

    # sum over positives of log_prob, without materializing log_prob:
    #   sum(mask * (shifted - lse)) = sum(mask*shifted) - sum(mask) * lse
    pos_logit_sum = jnp.sum(mask * shifted, axis=1, keepdims=True)  # (TILE_N, 1)
    pos_count = jnp.sum(mask, axis=1, keepdims=True)                # (TILE_N, 1)
    mean_log_prob_pos = pos_logit_sum - pos_count * lse

    # NOTE: matches the PyTorch code exactly — SUM over positives per row.
    loss_ref[...] = -(TEMPERATURE / BASE_TEMPERATURE) * mean_log_prob_pos


def _choose_tile_n(n):
    # Row tile: multiple of 8 (sublane), capped so double-buffered inputs plus
    # the (TILE_N, P) logits stay well inside v7x's smaller VMEM.
    for t in (1024, 512, 256, 128, 64, 32, 16, 8):
        if n >= t:
            return t
    return 8


def proto_con_loss(features, labels, protos, proto_labels, num_classes=None):
    """Pallas implementation of ProtoConloss.forward (num_classes unused, as in torch)."""
    del num_classes  # unused by the reference forward as well
    n, d = features.shape
    p_count = protos.shape[0]

    # --- hoisted once (not per row-tile): normalize protos, transpose, bf16 ---
    p32 = protos.astype(jnp.float32)
    p32 = p32 * jax.lax.rsqrt(
        jnp.maximum(jnp.sum(p32 * p32, axis=1, keepdims=True), EPS * EPS)
    )
    protos_t = p32.T.astype(jnp.bfloat16)  # (D, P)

    tile_n = _choose_tile_n(n)
    n_pad = ((n + tile_n - 1) // tile_n) * tile_n
    num_tiles = n_pad // tile_n

    feats = features
    labels_i = labels.astype(jnp.int32).reshape(n, 1)
    if n_pad != n:
        feats = jnp.pad(feats, ((0, n_pad - n), (0, 0)))
        labels_i = jnp.pad(labels_i, ((0, n_pad - n), (0, 0)), constant_values=-1)
    plabels = proto_labels.astype(jnp.int32).reshape(1, p_count)

    per_row = pl.pallas_call(
        _proto_con_kernel,
        out_shape=jax.ShapeDtypeStruct((n_pad, 1), jnp.float32),
        grid=(num_tiles,),
        in_specs=[
            pl.BlockSpec((tile_n, d), lambda i: (i, 0)),      # features (row tiles)
            pl.BlockSpec((d, p_count), lambda i: (0, 0)),     # protos^T (resident)
            pl.BlockSpec((tile_n, 1), lambda i: (i, 0)),      # labels
            pl.BlockSpec((1, p_count), lambda i: (0, 0)),     # proto_labels
        ],
        out_specs=pl.BlockSpec((tile_n, 1), lambda i: (i, 0)),
        compiler_params=pltpu.CompilerParams(
            dimension_semantics=("parallel",),
        ),
    )(feats, protos_t, labels_i, plabels)

    # Final scalar mean over the valid rows (tiny, done in XLA outside the kernel).
    return jnp.mean(per_row[:n, 0])


def _reference(features, labels, protos, proto_labels):
    # pure-JAX reference mirroring the PyTorch module, for verification (f32 path)
    f = features / jnp.maximum(jnp.linalg.norm(features, axis=1, keepdims=True), 1e-12)
    p = protos / jnp.maximum(jnp.linalg.norm(protos, axis=1, keepdims=True), 1e-12)
    logits = (f @ p.T) / TEMPERATURE
    logits = logits - jnp.max(logits, axis=1, keepdims=True)
    log_prob = logits - jnp.log(jnp.sum(jnp.exp(logits), axis=1, keepdims=True))
    mask = (labels[:, None] == proto_labels[None, :]).astype(jnp.float32)
    mean_log_prob_pos = jnp.sum(mask * log_prob, axis=1)
    return jnp.mean(-(TEMPERATURE / BASE_TEMPERATURE) * mean_log_prob_pos)


if __name__ == "__main__":
    key = jax.random.PRNGKey(0)

    # --- small demo shapes (single tile) ---
    k_feat, k_proto, k_lab = jax.random.split(key, 3)
    N, D, NUM_CLASSES = 8, 32, 4
    features = jax.random.normal(k_feat, (N, D), dtype=jnp.float32)
    protos = jax.random.normal(k_proto, (NUM_CLASSES, D), dtype=jnp.float32)
    labels = jax.random.randint(k_lab, (N,), 0, NUM_CLASSES, dtype=jnp.int32)
    proto_labels = jnp.arange(NUM_CLASSES, dtype=jnp.int32)

    loss = proto_con_loss(features, labels, protos, proto_labels, NUM_CLASSES)
    loss = jax.block_until_ready(loss)
    ref = _reference(features, labels, protos, proto_labels)
    # bf16 MXU operands introduce ~1e-2-level error in the logits -> loosen tol.
    assert jnp.allclose(loss, ref, atol=5e-2, rtol=5e-2), (loss, ref)

    # --- multi-tile + padding path (exercises grid and padded rows) ---
    k_feat2, k_proto2, k_lab2 = jax.random.split(jax.random.PRNGKey(1), 3)
    N2, D2, P2 = 300, 64, 12
    features2 = jax.random.normal(k_feat2, (N2, D2), dtype=jnp.float32)
    protos2 = jax.random.normal(k_proto2, (P2, D2), dtype=jnp.float32)
    labels2 = jax.random.randint(k_lab2, (N2,), 0, P2, dtype=jnp.int32)
    proto_labels2 = jnp.arange(P2, dtype=jnp.int32)

    loss2 = proto_con_loss(features2, labels2, protos2, proto_labels2, P2)
    loss2 = jax.block_until_ready(loss2)
    ref2 = _reference(features2, labels2, protos2, proto_labels2)
    assert jnp.allclose(loss2, ref2, atol=5e-2, rtol=5e-2), (loss2, ref2)

    print("KERNEL_OK")
</pallas_src>

<mosaic_0001>
module attributes {stable_mosaic.version = 11 : i64} {
  func.func @_proto_con_kernel(%arg0: i32, %arg1: memref<8x32xf32, #tpu.memory_space<vmem>>, %arg2: memref<32x4xbf16, #tpu.memory_space<vmem>>, %arg3: memref<8x1xi32, #tpu.memory_space<vmem>>, %arg4: memref<1x4xi32, #tpu.memory_space<vmem>>, %arg5: memref<8x1xf32, #tpu.memory_space<vmem>>) attributes {dimension_semantics = [#tpu.dimension_semantics<parallel>], iteration_bounds = array<i64: 1>, scalar_prefetch = 0 : i64, scratch_operands = 0 : i64, tpu.core_type = #tpu.core_type<tc>, window_params = [{transform_indices = @transform_0, window_bounds = array<i64: 8, 32>}, {pipeline_mode = #tpu.pipeline_mode<synchronous>, transform_indices = @transform_1, window_bounds = array<i64: 32, 4>}, {transform_indices = @transform_2, window_bounds = array<i64: 8, 1>}, {pipeline_mode = #tpu.pipeline_mode<synchronous>, transform_indices = @transform_3, window_bounds = array<i64: 1, 4>}, {transform_indices = @transform_4, window_bounds = array<i64: 8, 1>}]} {
    %c0 = arith.constant 0 : index
    %c0_0 = arith.constant 0 : index
    %0 = vector.load %arg1[%c0, %c0_0] : memref<8x32xf32, #tpu.memory_space<vmem>>, vector<8x32xf32>
    %1 = arith.mulf %0, %0 : vector<8x32xf32>
    %cst = arith.constant dense<0.000000e+00> : vector<8xf32>
    %2 = vector.multi_reduction <add>, %1, %cst [1] : vector<8x32xf32> to vector<8xf32>
    %3 = vector.shape_cast %2 : vector<8xf32> to vector<8x1xf32>
    %cst_1 = arith.constant 1.000000e-24 : f32
    %4 = vector.broadcast %cst_1 : f32 to vector<8x1xf32>
    %5 = arith.maximumf %3, %4 : vector<8x1xf32>
    %6 = math.rsqrt %5 : vector<8x1xf32>
    %cst_2 = arith.constant 14.2857141 : f32
    %7 = vector.broadcast %cst_2 : f32 to vector<8x1xf32>
    %8 = arith.mulf %6, %7 : vector<8x1xf32>
    %9 = vector.broadcast %8 : vector<8x1xf32> to vector<8x32xf32>
    %10 = arith.mulf %0, %9 : vector<8x32xf32>
    %11 = arith.truncf %10 : vector<8x32xf32> to vector<8x32xbf16>
    %c0_3 = arith.constant 0 : index
    %c0_4 = arith.constant 0 : index
    %12 = vector.load %arg2[%c0_3, %c0_4] : memref<32x4xbf16, #tpu.memory_space<vmem>>, vector<32x4xbf16>
    %cst_5 = arith.constant dense<0.000000e+00> : vector<8x4xf32>
    %13 = tpu.matmul %11, %12, %cst_5 {dimension_numbers = #tpu.dot_dimension_numbers<[1], [0], [0], [1], [0, 0, 1, 1], [], []>} : vector<8x32xbf16>, vector<32x4xbf16>, vector<8x4xf32> -> vector<8x4xf32>
    %cst_6 = arith.constant dense<0xFF800000> : vector<8xf32>
    %14 = vector.multi_reduction <maximumf>, %13, %cst_6 [1] : vector<8x4xf32> to vector<8xf32>
    %15 = vector.shape_cast %14 : vector<8xf32> to vector<8x1xf32>
    %16 = vector.broadcast %15 : vector<8x1xf32> to vector<8x4xf32>
    %17 = arith.subf %13, %16 : vector<8x4xf32>
    %18 = math.exp %17 : vector<8x4xf32>
    %cst_7 = arith.constant dense<0.000000e+00> : vector<8xf32>
    %19 = vector.multi_reduction <add>, %18, %cst_7 [1] : vector<8x4xf32> to vector<8xf32>
    %20 = vector.shape_cast %19 : vector<8xf32> to vector<8x1xf32>
    %21 = math.log %20 : vector<8x1xf32>
    %c0_8 = arith.constant 0 : index
    %c0_9 = arith.constant 0 : index
    %22 = vector.load %arg3[%c0_8, %c0_9] : memref<8x1xi32, #tpu.memory_space<vmem>>, vector<8x1xi32>
    %c0_10 = arith.constant 0 : index
    %c0_11 = arith.constant 0 : index
    %23 = vector.load %arg4[%c0_10, %c0_11] : memref<1x4xi32, #tpu.memory_space<vmem>>, vector<1x4xi32>
    %24 = vector.broadcast %22 : vector<8x1xi32> to vector<8x4xi32>
    %25 = vector.broadcast %23 : vector<1x4xi32> to vector<8x4xi32>
    %26 = arith.cmpi eq, %24, %25 : vector<8x4xi32>
    %27 = arith.extui %26 : vector<8x4xi1> to vector<8x4xi32>
    %28 = arith.sitofp %27 : vector<8x4xi32> to vector<8x4xf32>
    %29 = arith.mulf %28, %17 : vector<8x4xf32>
    %cst_12 = arith.constant dense<0.000000e+00> : vector<8xf32>
    %30 = vector.multi_reduction <add>, %29, %cst_12 [1] : vector<8x4xf32> to vector<8xf32>
    %31 = vector.shape_cast %30 : vector<8xf32> to vector<8x1xf32>
    %cst_13 = arith.constant dense<0.000000e+00> : vector<8xf32>
    %32 = vector.multi_reduction <add>, %28, %cst_13 [1] : vector<8x4xf32> to vector<8xf32>
    %33 = vector.shape_cast %32 : vector<8xf32> to vector<8x1xf32>
    %34 = arith.mulf %33, %21 : vector<8x1xf32>
    %35 = arith.subf %31, %34 : vector<8x1xf32>
    %cst_14 = arith.constant -1.000000e+00 : f32
    %36 = vector.broadcast %cst_14 : f32 to vector<8x1xf32>
    %37 = arith.mulf %36, %35 : vector<8x1xf32>
    %c0_15 = arith.constant 0 : index
    %c0_16 = arith.constant 0 : index
    %38 = vector.load %arg5[%c0_15, %c0_16] : memref<8x1xf32, #tpu.memory_space<vmem>>, vector<8x1xf32>
    tpu.vector_store %arg5[%c0_15, %c0_16], %37 {strides = array<i32>} : memref<8x1xf32, #tpu.memory_space<vmem>>, vector<8x1xf32>,
    return
  }
  func.func @transform_0(%arg0: i32) -> (i32, i32) {
    %c0_i32 = arith.constant 0 : i32
    %c0_i32_0 = arith.constant 0 : i32
    return %arg0, %c0_i32 : i32, i32
  }
  func.func @transform_1(%arg0: i32) -> (i32, i32) {
    %c0_i32 = arith.constant 0 : i32
    %c0_i32_0 = arith.constant 0 : i32
    %c0_i32_1 = arith.constant 0 : i32
    return %c0_i32, %c0_i32_0 : i32, i32
  }
  func.func @transform_2(%arg0: i32) -> (i32, i32) {
    %c0_i32 = arith.constant 0 : i32
    %c0_i32_0 = arith.constant 0 : i32
    return %arg0, %c0_i32 : i32, i32
  }
  func.func @transform_3(%arg0: i32) -> (i32, i32) {
    %c0_i32 = arith.constant 0 : i32
    %c0_i32_0 = arith.constant 0 : i32
    %c0_i32_1 = arith.constant 0 : i32
    return %c0_i32, %c0_i32_0 : i32, i32
  }
  func.func @transform_4(%arg0: i32) -> (i32, i32) {
    %c0_i32 = arith.constant 0 : i32
    %c0_i32_0 = arith.constant 0 : i32
    return %arg0, %c0_i32 : i32, i32
  }
}

</mosaic_0001>

<bundles_post_ra>
// kernel: tpu_custom_call.1
= control target key start
LH: loop header
LB: loop body
LE: loop exit
PB: predicated region body
PF: predicated region fallthrough
CT: control target
= control target key end

     0   :  { %vm20_vm0 = vcmask 261120   ;;  %v157_v4 = vmov 0.0   ;;  %vm158_vm1 = vmmov 0   ;;  %v159_v12 = vmov 0   ;;  %s209_s0 = inlined_call_operand.vmem [shape: f32[8,32], index: 0, kind: input, shape index: {}]   ;;  %s210_s1 = inlined_call_operand.vmem [shape: bf16[32,4], index: 1, kind: input, shape index: {}]   ;;  %s211_s2 = inlined_call_operand.vmem [shape: s32[8,1], index: 2, kind: input, shape index: {}]   ;;  %s212_s3 = inlined_call_operand.vmem [shape: s32[1,4], index: 3, kind: input, shape index: {}]   ;;  %s213_s4 = inlined_call_operand.vmem [shape: f32[8,1], index: 4, kind: output, shape index: {}]  }
   0x1   :  { %v18_v0 = vld [vmem:[%s209_s0] sm:$0xff]  ;;  %v149_v3 = vld [vmem:[%s210_s1 + $0x8] sm:$0xff]   ;;  %136 = vmatprep.subr.bf16.mxu0 %v157_v4  ;;  %140 = vmatprep.mubr.msk.bf16.mxu0 %vm158_vm1, %v157_v4  ;;  %vm88_vm2 = vcmask 31744   ;;  %vm122_vm4 = vcmask 7168  }
   0x2   :  { %v19_v1 = vmul.f32 %v18_v0, %v18_v0  ;;  %137 = vmatpush3.bf16.msra.mxu0 %v149_v3  ;;  %v150_v5 = vld [vmem:[%s210_s1] sm:$0xff]   ;;  %147 = vset.pattern.permute.xlu1 %v159_v12 }
   0x3   :  { %138 = vmatprep.subr.bf16.mxu0 %v157_v4  ;;  %v100_v13 = vld [vmem:[%s211_s2] sm:$0xff]  ;;  %148 = vset.pattern.permute.xlu0 %v159_v12 }
   0x4   :  { %v21_v2 = vsel %vm20_vm0, %v19_v1, 0.0  ;;  %103 = vperm.xlu1 %147, %v100_v13   ;;  %v131_v18 = vld [vmem:[%s212_s3] ss:$0 sm:$0xff] }
   0x5   :  { %22 = vadd.xlane.f32.xlu0 %v21_v2 }
   0x6   :  { %139 = vmatpush3.bf16.msra.mxu0 %v150_v5 }
  0x7f   :  { %v104_v19 = vpop.permute.xlu1 %103 }
  0x80   :  { %vm109_vm3 = vcmp.eq.s32.totalorder %v104_v19, %v131_v18 }
  0x81   :  { %v132_v21 = vsel %vm109_vm3, 1.0, %v157_v4 }
  0x82   :  { %v116_v22 = vsel %vm88_vm2, %v132_v21, 0.0 }
  0x8e   :  { %v23_v6 = vpop.xlane.xlu0 %22 }
  0x8f   :  { %v24_v7 = vmax.f32 %v23_v6, 1e-24 }
  0x91   :  { %151 = vrsqrt.f32 %v24_v7 }
  0x9e   :  { %v152_v8 = vpop.eup %151 }
  0x9f   :  { %v26_v9 = vmul.f32 14.285714, %v152_v8 }
  0xa1   :  { %v27_v10 = vmul.f32 %v26_v9, %v18_v0 }
  0xa3   :  { %v28_v11 = vpack.c.bf16 %v27_v10, %v27_v10 }
  0xa5   :  { %141 = vmatmul.mubr.msk.bf16.vlgmr.msra.gmra.mxu0 %vm20_vm0, %v28_v11 }
 0x165   :  { %v82_v14 = vpop.f32.mrf.mxu0 }
 0x166   :  { %v89_v15 = vsel %vm88_vm2, %v82_v14, -inf }
 0x167   :  { %90 = vmax.xlane.f32.xlu0 %v89_v15  ;;  %v142_v16 = vpop.f32.mrf.mxu0 }
 0x169   :  { %v85_v17 = vpop.f32.mrf.mxu0 }
 0x16b   :  { %v143_v20 = vpop.f32.mrf.mxu0  ;;  %117 = vadd.xlane.f32.xlu0 %v116_v22 }
 0x1f0   :  { %v91_v23 = vpop.xlane.xlu0 %90 }
 0x1f1   :  { %v92_v24 = vsub.f32 %v82_v14, %v91_v23 }
 0x1f3   :  { %v93_v25 = vmul.f32 1.442695, %v92_v24  ;;  %v112_v26 = vmul.f32 %v132_v21, %v92_v24 }
 0x1f4   :  { %v118_v31 = vpop.xlane.xlu0 %117 }
 0x1f5   :  { %153 = vpow2.f32 %v93_v25  ;;  %v113_v27 = vsel %vm88_vm2, %v112_v26, 0.0 }
 0x1f6   :  { %114 = vadd.xlane.f32.xlu0 %v113_v27 }
 0x202   :  { %v154_v28 = vpop.eup %153 }
 0x203   :  { %v95_v29 = vsel %vm88_vm2, %v154_v28, 0.0 }
 0x204   :  { %96 = vadd.xlane.f32.xlu1 %v95_v29 }
 0x27f   :  { %v115_v35 = vpop.xlane.xlu0 %114 }
 0x28d   :  { %v97_v30 = vpop.xlane.xlu1 %96 }
 0x28e   :  { %155 = vlog2.f32 %v97_v30 }
 0x29b   :  { %v156_v32 = vpop.eup %155 }
 0x29c   :  { %v99_v33 = vmul.f32 0.6931472, %v156_v32 }
 0x29e   :  { %v119_v34 = vmul.f32 %v118_v31, %v99_v33 }
 0x2a0   :  { %v120_v36 = vsub.f32 %v115_v35, %v119_v34 }
 0x2a2   :  { %v121_v37 = vmul.f32 -1.0, %v120_v36 }
 0x2a4   :  { %123 = vst.msk [vmem:[%s213_s4] sm:$0xff] %vm122_vm4, %v121_v37 }

</bundles_post_ra>
